<compile_context>
chip_gen: v6e
topology: v6e:2x2x1
jax: 0.10.0
libtpu: 0.0.40
codegen_flags: <defaults>
</compile_context>

<pallas_src>
import jax
import jax.numpy as jnp
from jax.experimental import pallas as pl
from jax.experimental.pallas import tpu as pltpu


def _leaky_relu(x, slope=0.2):
    # max(x, slope*x) == LeakyReLU(slope) for slope in (0, 1).
    return jnp.maximum(x, slope * x)


def _round_up(n, m):
    return (n + m - 1) // m * m


def discriminator_kernel(xT_ref, w1e_ref, w2t_ref, slab_ref, o_ref):
    # xT_ref:  (8, TB)   bf16, rows 0..2 = features, row 3 = ones (bias), rows 4..7 = 0
    # w1e_ref: (256, 8)  bf16, cols 0..2 = W1^T, col 3 = b1, cols 4..7 = 0
    # w2t_ref: (128, 256) bf16 (W2^T)
    # slab_ref: (128, 3) f32 -> col 0 = b2, col 1 = w3, [0, 2] = b3

    # --- Linear(3, 256) on the MXU (K padded to 8; bias fused via the ones-row).
    h1 = jnp.dot(w1e_ref[...], xT_ref[...],
                 preferred_element_type=jnp.float32)          # (256, TB) f32
    h1 = _leaky_relu(h1)
    # Dropout(0.3): identity in eval/inference mode.
    # TODO(synk): add pltpu.prng_* based training-mode dropout if stochastic semantics needed.

    # --- Linear(256, 128) on the MXU, bf16 operands, f32 accumulate.
    h2 = jnp.dot(w2t_ref[...], h1.astype(jnp.bfloat16),
                 preferred_element_type=jnp.float32)          # (128, TB) f32
    h2 = _leaky_relu(h2 + slab_ref[:, 0:1])
    # Dropout(0.3): identity in eval/inference mode.

    # --- Linear(128, 1): N=1 is degenerate on the MXU -> VPU multiply + sublane reduce.
    z = jnp.sum(slab_ref[:, 1:2] * h2, axis=0, keepdims=True) + slab_ref[0:1, 2:3]  # (1, TB)

    # --- Sigmoid: exp and approx reciprocal both land on the EUP slot.
    o_ref[...] = pl.reciprocal(1.0 + jnp.exp(-z), approx=True).astype(o_ref.dtype)


def discriminator_forward(x, params, *, max_tile=4096):
    """x: (B, 3) float32 -> (B, 1) float32 (eval-mode forward)."""
    w1, b1, w2, b2, w3, b3 = params
    B = x.shape[0]

    # Lane-aligned batch tile; aim for >= 2 tiles so v7x's 2 TCs both get work.
    TB = min(max_tile, max(128, _round_up(pl.cdiv(B, 2), 128)))
    B_pad = _round_up(B, TB)
    num_tiles = B_pad // TB

    # Transposed, zero-padded layouts: batch on lanes, K padded 3 -> 8 with ones-row.
    xT = jnp.zeros((8, B_pad), jnp.float32)
    xT = xT.at[:3, :B].set(x.T)
    xT = xT.at[3, :].set(1.0)
    xT = xT.astype(jnp.bfloat16)

    w1e = jnp.zeros((256, 8), jnp.float32)
    w1e = w1e.at[:, :3].set(w1.T)
    w1e = w1e.at[:, 3].set(b1.reshape(-1))
    w1e = w1e.astype(jnp.bfloat16)                          # (256, 8)

    w2t = w2.T.astype(jnp.bfloat16)                         # (128, 256)

    slab = jnp.zeros((128, 3), jnp.float32)
    slab = slab.at[:, 0].set(b2.reshape(-1))                # b2
    slab = slab.at[:, 1].set(w3.reshape(-1))                # w3
    slab = slab.at[0, 2].set(b3.reshape(-1)[0])             # b3

    param_bytes = 2 * (w1e.size + w2t.size) + 4 * slab.size
    cost = pl.CostEstimate(
        flops=2 * B_pad * (8 * 256 + 256 * 128 + 128),
        transcendentals=B_pad,
        bytes_accessed=2 * 8 * B_pad + 4 * B_pad + param_bytes,
    )

    out = pl.pallas_call(
        discriminator_kernel,
        out_shape=jax.ShapeDtypeStruct((1, B_pad), jnp.float32),
        grid=(num_tiles,),
        in_specs=[
            pl.BlockSpec((8, TB), lambda i: (0, i), memory_space=pltpu.VMEM),
            pl.BlockSpec((256, 8), lambda i: (0, 0), memory_space=pltpu.VMEM),
            pl.BlockSpec((128, 256), lambda i: (0, 0), memory_space=pltpu.VMEM),
            pl.BlockSpec((128, 3), lambda i: (0, 0), memory_space=pltpu.VMEM),
        ],
        out_specs=pl.BlockSpec((1, TB), lambda i: (0, i), memory_space=pltpu.VMEM),
        compiler_params=pltpu.CompilerParams(dimension_semantics=("parallel",)),
        cost_estimate=cost,
    )(xT, w1e, w2t, slab)

    return out[0, :B].reshape(B, 1)


def init_params(key):
    """Deterministic init mimicking PyTorch nn.Linear default (U[-1/sqrt(fan_in), 1/sqrt(fan_in)]).

    Weights stored as (in_features, out_features), so y = x @ W + b (== PyTorch x @ W.T + b).
    """
    dims = [(3, 256), (256, 128), (128, 1)]
    params = []
    for i, (fan_in, fan_out) in enumerate(dims):
        kw, kb = jax.random.split(jax.random.fold_in(key, i))
        bound = 1.0 / (fan_in ** 0.5)
        w = jax.random.uniform(kw, (fan_in, fan_out), jnp.float32, -bound, bound)
        b = jax.random.uniform(kb, (1, fan_out), jnp.float32, -bound, bound)
        params += [w, b]
    return tuple(params)


def reference_forward(x, params):
    w1, b1, w2, b2, w3, b3 = params
    h = jnp.maximum(x @ w1 + b1, 0.2 * (x @ w1 + b1))
    h = jnp.maximum(h @ w2 + b2, 0.2 * (h @ w2 + b2))
    return jax.nn.sigmoid(h @ w3 + b3)


if __name__ == "__main__":
    key = jax.random.PRNGKey(0)
    params = init_params(key)

    # Small batch (single tile) check.
    B = 8
    x = jax.random.normal(jax.random.fold_in(key, 99), (B, 3), jnp.float32)
    out = jax.block_until_ready(discriminator_forward(x, params))
    ref = reference_forward(x, params)
    assert out.shape == (B, 1), out.shape
    # bf16 matmuls + approx reciprocal => looser tolerance vs the f32 reference.
    assert jnp.allclose(out, ref, atol=1e-2, rtol=1e-2), (out, ref)

    # Larger, non-multiple batch to exercise padding and a multi-tile "parallel" grid.
    B2 = 300
    x2 = jax.random.normal(jax.random.fold_in(key, 123), (B2, 3), jnp.float32)
    out2 = jax.block_until_ready(discriminator_forward(x2, params))
    ref2 = reference_forward(x2, params)
    assert out2.shape == (B2, 1), out2.shape
    assert jnp.allclose(out2, ref2, atol=1e-2, rtol=1e-2)

    print("KERNEL_OK")
</pallas_src>

<mosaic_0001>
module attributes {stable_mosaic.version = 11 : i64} {
  func.func @discriminator_kernel(%arg0: i32, %arg1: memref<8x128xbf16, #tpu.memory_space<vmem>>, %arg2: memref<256x8xbf16, #tpu.memory_space<vmem>>, %arg3: memref<128x256xbf16, #tpu.memory_space<vmem>>, %arg4: memref<128x3xf32, #tpu.memory_space<vmem>>, %arg5: memref<1x128xf32, #tpu.memory_space<vmem>>) attributes {dimension_semantics = [#tpu.dimension_semantics<parallel>], iteration_bounds = array<i64: 1>, scalar_prefetch = 0 : i64, scratch_operands = 0 : i64, tpu.core_type = #tpu.core_type<tc>, window_params = [{transform_indices = @transform_0, window_bounds = array<i64: 8, 128>}, {pipeline_mode = #tpu.pipeline_mode<synchronous>, transform_indices = @transform_1, window_bounds = array<i64: 256, 8>}, {pipeline_mode = #tpu.pipeline_mode<synchronous>, transform_indices = @transform_2, window_bounds = array<i64: 128, 256>}, {pipeline_mode = #tpu.pipeline_mode<synchronous>, transform_indices = @transform_3, window_bounds = array<i64: 128, 3>}, {transform_indices = @transform_4, window_bounds = array<i64: 1, 128>}]} {
    %c0 = arith.constant 0 : index
    %c0_0 = arith.constant 0 : index
    %0 = vector.load %arg2[%c0, %c0_0] : memref<256x8xbf16, #tpu.memory_space<vmem>>, vector<256x8xbf16>
    %c0_1 = arith.constant 0 : index
    %c0_2 = arith.constant 0 : index
    %1 = vector.load %arg1[%c0_1, %c0_2] : memref<8x128xbf16, #tpu.memory_space<vmem>>, vector<8x128xbf16>
    %cst = arith.constant dense<0.000000e+00> : vector<256x128xf32>
    %2 = tpu.matmul %0, %1, %cst {dimension_numbers = #tpu.dot_dimension_numbers<[1], [0], [0], [1], [0, 0, 1, 1], [], []>} : vector<256x8xbf16>, vector<8x128xbf16>, vector<256x128xf32> -> vector<256x128xf32>
    %cst_3 = arith.constant 2.000000e-01 : f32
    %3 = vector.broadcast %cst_3 : f32 to vector<256x128xf32>
    %4 = arith.mulf %3, %2 : vector<256x128xf32>
    %5 = arith.maximumf %2, %4 : vector<256x128xf32>
    %c0_4 = arith.constant 0 : index
    %c0_5 = arith.constant 0 : index
    %6 = vector.load %arg3[%c0_4, %c0_5] : memref<128x256xbf16, #tpu.memory_space<vmem>>, vector<128x256xbf16>
    %7 = arith.truncf %5 : vector<256x128xf32> to vector<256x128xbf16>
    %cst_6 = arith.constant dense<0.000000e+00> : vector<128x128xf32>
    %8 = tpu.matmul %6, %7, %cst_6 {dimension_numbers = #tpu.dot_dimension_numbers<[1], [0], [0], [1], [0, 0, 1, 1], [], []>} : vector<128x256xbf16>, vector<256x128xbf16>, vector<128x128xf32> -> vector<128x128xf32>
    %c0_7 = arith.constant 0 : index
    %c0_8 = arith.constant 0 : index
    %9 = vector.load %arg4[%c0_7, %c0_8] : memref<128x3xf32, #tpu.memory_space<vmem>>, vector<128x1xf32>
    %10 = vector.broadcast %9 : vector<128x1xf32> to vector<128x128xf32>
    %11 = arith.addf %8, %10 : vector<128x128xf32>
    %cst_9 = arith.constant 2.000000e-01 : f32
    %12 = vector.broadcast %cst_9 : f32 to vector<128x128xf32>
    %13 = arith.mulf %12, %11 : vector<128x128xf32>
    %14 = arith.maximumf %11, %13 : vector<128x128xf32>
    %c0_10 = arith.constant 0 : index
    %c1 = arith.constant 1 : index
    %15 = vector.load %arg4[%c0_10, %c1] : memref<128x3xf32, #tpu.memory_space<vmem>>, vector<128x1xf32>
    %16 = vector.broadcast %15 : vector<128x1xf32> to vector<128x128xf32>
    %17 = arith.mulf %16, %14 : vector<128x128xf32>
    %cst_11 = arith.constant dense<0.000000e+00> : vector<128xf32>
    %18 = vector.multi_reduction <add>, %17, %cst_11 [0] : vector<128x128xf32> to vector<128xf32>
    %19 = vector.shape_cast %18 : vector<128xf32> to vector<1x128xf32>
    %c0_12 = arith.constant 0 : index
    %c2 = arith.constant 2 : index
    %20 = vector.load %arg4[%c0_12, %c2] : memref<128x3xf32, #tpu.memory_space<vmem>>, vector<1x1xf32>
    %21 = vector.broadcast %20 : vector<1x1xf32> to vector<1x128xf32>
    %22 = arith.addf %19, %21 : vector<1x128xf32>
    %cst_13 = arith.constant 0.000000e+00 : f32
    %23 = vector.broadcast %cst_13 : f32 to vector<1x128xf32>
    %24 = arith.subf %23, %22 : vector<1x128xf32>
    %25 = math.exp %24 : vector<1x128xf32>
    %cst_14 = arith.constant 1.000000e+00 : f32
    %26 = vector.broadcast %cst_14 : f32 to vector<1x128xf32>
    %27 = arith.addf %26, %25 : vector<1x128xf32>
    %28 = tpu.reciprocal %27 {approx = true} : vector<1x128xf32> -> vector<1x128xf32>
    %c0_15 = arith.constant 0 : index
    %c0_16 = arith.constant 0 : index
    %29 = vector.load %arg5[%c0_15, %c0_16] : memref<1x128xf32, #tpu.memory_space<vmem>>, vector<1x128xf32>
    tpu.vector_store %arg5[%c0_15, %c0_16], %28 {strides = array<i32>} : memref<1x128xf32, #tpu.memory_space<vmem>>, vector<1x128xf32>,
    return
  }
  func.func @transform_0(%arg0: i32) -> (i32, i32) {
    %c0_i32 = arith.constant 0 : i32
    %c0_i32_0 = arith.constant 0 : i32
    return %c0_i32, %arg0 : i32, i32
  }
  func.func @transform_1(%arg0: i32) -> (i32, i32) {
    %c0_i32 = arith.constant 0 : i32
    %c0_i32_0 = arith.constant 0 : i32
    %c0_i32_1 = arith.constant 0 : i32
    return %c0_i32, %c0_i32_0 : i32, i32
  }
  func.func @transform_2(%arg0: i32) -> (i32, i32) {
    %c0_i32 = arith.constant 0 : i32
    %c0_i32_0 = arith.constant 0 : i32
    %c0_i32_1 = arith.constant 0 : i32
    return %c0_i32, %c0_i32_0 : i32, i32
  }
  func.func @transform_3(%arg0: i32) -> (i32, i32) {
    %c0_i32 = arith.constant 0 : i32
    %c0_i32_0 = arith.constant 0 : i32
    %c0_i32_1 = arith.constant 0 : i32
    return %c0_i32, %c0_i32_0 : i32, i32
  }
  func.func @transform_4(%arg0: i32) -> (i32, i32) {
    %c0_i32 = arith.constant 0 : i32
    %c0_i32_0 = arith.constant 0 : i32
    return %c0_i32, %arg0 : i32, i32
  }
}

</mosaic_0001>

<bundles_post_ra>
// kernel: tpu_custom_call.1
= control target key start
LH: loop header
LB: loop body
LE: loop exit
PB: predicated region body
PF: predicated region fallthrough
CT: control target
= control target key end

     0   :  { %vm181_vm0 = vcmask 1043456   ;;  %vm132_vm1 = vcmask 64512   ;;  %s1493_s0 = inlined_call_operand.vmem [shape: bf16[8,128], index: 0, kind: input, shape index: {}]   ;;  %s1494_s1 = inlined_call_operand.vmem [shape: bf16[256,8], index: 1, kind: input, shape index: {}]   ;;  %s1495_s2 = inlined_call_operand.vmem [shape: bf16[128,256], index: 2, kind: input, shape index: {}]   ;;  %s1496_s3 = inlined_call_operand.vmem [shape: f32[128,3], index: 3, kind: input, shape index: {}]   ;;  %s1497_s4 = inlined_call_operand.hbm [shape: f32[1,128], index: 4, kind: output, shape index: {}]  }
   0x1   :  { %v51_v0 = vld [vmem:[%s1493_s0] sm:$0xf]  ;;  %v1076_v3 = vld [vmem:[%s1494_s1 + $0x8] sm:$0xff]   ;;  %v1077_v4 = vld [vmem:[%s1494_s1 + $0x10] sm:$0xff]  }
   0x2   :  { %v1075_v1 = vld [vmem:[%s1494_s1] sm:$0xff]   ;;  %1054 = vmatprep.subr.msk.bf16.mxu0 %vm181_vm0, %v51_v0  ;;  %v183_v2 = vsel %vm181_vm0, %v51_v0, 0  ;;  %v1078_v5 = vld [vmem:[%s1494_s1 + $0x18] sm:$0xff]   ;;  %v1080_v7 = vld [vmem:[%s1494_s1 + $0x28] sm:$0xff]  }
   0x3   :  { %1005 = vmatpush3.bf16.msra.mxu0 %v183_v2  ;;  %1006 = vmatprep.mubr.msk.bf16.mxu0 %vm132_vm1, %v1075_v1  ;;  %v1079_v6 = vld [vmem:[%s1494_s1 + $0x20] sm:$0xff]   ;;  %v1081_v8 = vld [vmem:[%s1494_s1 + $0x30] sm:$0xff]  }
   0x6   :  { %1007 = vmatmul.mubr.msk.bf16.vlgmr.msra.gmra.mxu0 %vm132_vm1, %v1076_v3 }
   0x7   :  { %1010 = vmatprep.mubr.msk.bf16.mxu0 %vm132_vm1, %v1077_v4 }
   0xe   :  { %1011 = vmatmul.mubr.msk.bf16.gmra.mxu0 %vm132_vm1, %v1078_v5 }
   0xf   :  { %1014 = vmatprep.mubr.msk.bf16.mxu0 %vm132_vm1, %v1079_v6 }
  0x16   :  { %1015 = vmatmul.mubr.msk.bf16.gmra.mxu0 %vm132_vm1, %v1080_v7 }
  0x17   :  { %1018 = vmatprep.mubr.msk.bf16.mxu0 %vm132_vm1, %v1081_v8 }
  0x18   :  { %9 = vsyncpa [#allocation3], 0  ;;  %v1082_v9 = vld [vmem:[%s1494_s1 + $0x38] sm:$0xff]   ;;  %v1083_v10 = vld [vmem:[%s1494_s1 + $0x40] sm:$0xff]   ;;  %v1141_v24 = vmov 0   ;;  %v1142_v43 = vmov 1  }
  0x19   :  { %v1084_v11 = vld [vmem:[%s1494_s1 + $0x48] sm:$0xff]   ;;  %v1085_v12 = vld [vmem:[%s1494_s1 + $0x50] sm:$0xff]   ;;  %v1086_v13 = vld [vmem:[%s1494_s1 + $0x58] sm:$0xff]   ;;  %1060 = vset.pattern.permute.xlu1 %v1141_v24  ;;  %1059 = vset.pattern.permute.xlu0 %v1141_v24 }
  0x1a   :  { %v1087_v14 = vld [vmem:[%s1494_s1 + $0x60] sm:$0xff]   ;;  %v1088_v15 = vld [vmem:[%s1494_s1 + $0x68] sm:$0xff]   ;;  %v1089_v16 = vld [vmem:[%s1494_s1 + $0x70] sm:$0xff]  }
  0x1b   :  { %v1090_v17 = vld [vmem:[%s1494_s1 + $0x78] sm:$0xff]   ;;  %v1093_v18 = vld [vmem:[%s1495_s2 + $0x4] ss:$8 sps:$4 sm:$0xff]   ;;  %v444_v25 = vld [vmem:[%s1496_s3 + $0x10] sm:$0xff] }
  0x1c   :  { %v1096_v19 = vld [vmem:[%s1495_s2 + $0x14] ss:$8 sps:$4 sm:$0xff]   ;;  %470 = vperm.xlu1 %1060, %v444_v25   ;;  %v442_v44 = vld [vmem:[%s1496_s3] sm:$0xff]  ;;  %v447_v54 = vld [vmem:[%s1496_s3 + $0x28] sm:$0xff] }
  0x1d   :  { %658 = vmatprep.mubr.bf16.mxu1 %v1096_v19  ;;  %v445_v33 = vld [vmem:[%s1496_s3 + $0x18] sm:$0xff]  ;;  %460 = vperm.xlu0 %1059, %v442_v44   ;;  %v443_v56 = vld [vmem:[%s1496_s3 + $0x8] sm:$0xff]  ;;  %v446_v58 = vld [vmem:[%s1496_s3 + $0x20] sm:$0xff] }
  0x1e   :  { %1019 = vmatmul.mubr.msk.bf16.gmra.mxu0 %vm132_vm1, %v1082_v9  ;;  %v448_v62 = vld [vmem:[%s1496_s3 + $0x30] sm:$0xff]  ;;  %v449_v1 = vld [vmem:[%s1496_s3 + $0x38] sm:$0xff]  ;;  %v450_v4 = vld [vmem:[%s1496_s3 + $0x40] sm:$0xff] }
  0x1f   :  { %1022 = vmatprep.mubr.msk.bf16.mxu0 %vm132_vm1, %v1083_v10  ;;  %v452_v10 = vld [vmem:[%s1496_s3 + $0x50] sm:$0xff]  ;;  %v1347_v19 = vld [vmem:[%s1496_s3 + $0x78] sm:$0xff] }
  0x20   :  { %475 = vperm.xlu1 %1060, %v445_v33  }
  0x21   :  { %465 = vperm.xlu0 %1059, %v443_v56  }
  0x24   :  { %1061 = vset.pattern.permute.xlu1 %v1142_v43 }
  0x25   :  { %748 = vperm.xlu1 %1061, %v442_v44   ;;  %480 = vperm.xlu0 %1059, %v446_v58  }
  0x26   :  { %1023 = vmatmul.mubr.msk.bf16.gmra.mxu0 %vm132_vm1, %v1084_v11 }
  0x27   :  { %1026 = vmatprep.mubr.msk.bf16.mxu0 %vm132_vm1, %v1085_v12 }
  0x29   :  { %1062 = vset.pattern.permute.xlu1 %v1141_v24  ;;  %490 = vperm.xlu0 %1059, %v448_v62  }
  0x2a   :  { %485 = vperm.xlu1 %1062, %v447_v54  }
  0x2d   :  { %1064 = vset.pattern.permute.xlu0 %v1142_v43 }
  0x2e   :  { %1027 = vmatmul.mubr.msk.bf16.gmra.mxu0 %vm132_vm1, %v1086_v13  ;;  %1063 = vset.pattern.permute.xlu1 %v1142_v43  ;;  %v451_v13 = vld [vmem:[%s1496_s3 + $0x48] sm:$0xff] }
  0x2f   :  { %1030 = vmatprep.mubr.msk.bf16.mxu0 %vm132_vm1, %v1087_v14  ;;  %756 = vperm.xlu1 %1063, %v444_v25  }
  0x30   :  { %752 = vperm.xlu0 %1064, %v443_v56  }
  0x33   :  { %760 = vperm.xlu1 %1063, %v445_v33  }
  0x34   :  { %764 = vperm.xlu0 %1064, %v446_v58  }
  0x36   :  { %1031 = vmatmul.mubr.msk.bf16.gmra.mxu0 %vm132_vm1, %v1088_v15  ;;  %v1333_v15 = vld [vmem:[%s1496_s3 + $0x60] sm:$0xff] }
  0x37   :  { %1034 = vmatprep.mubr.msk.bf16.mxu0 %vm132_vm1, %v1089_v16  ;;  %1065 = vset.pattern.permute.xlu1 %v1141_v24 }
  0x38   :  { %495 = vperm.xlu1 %1065, %v449_v1   ;;  %776 = vperm.xlu0 %1064, %v449_v1  }
  0x3c   :  { %500 = vperm.xlu1 %1065, %v450_v4   ;;  %788 = vperm.xlu0 %1064, %v452_v10  }
  0x3e   :  { %1035 = vmatmul.mubr.msk.bf16.gmra.mxu0 %vm132_vm1, %v1090_v17  ;;  %v1338_v17 = vld [vmem:[%s1496_s3 + $0x58] sm:$0xff] }
  0x3f   :  { %650 = vmatprep.mubr.bf16.mxu0 %v1093_v18 }
  0x40   :  { %1066 = vset.pattern.permute.xlu1 %v1142_v43  ;;  %1070 = vset.pattern.permute.xlu0 %v1141_v24 }
  0x41   :  { %768 = vperm.xlu1 %1066, %v447_v54   ;;  %505 = vperm.xlu0 %1070, %v451_v13  }
  0x45   :  { %772 = vperm.xlu1 %1066, %v448_v62   ;;  %520 = vperm.xlu0 %1070, %v1333_v15  }
  0x49   :  { %1067 = vset.pattern.permute.xlu1 %v1141_v24  ;;  %535 = vperm.xlu0 %1070, %v1347_v19  }
  0x4a   :  { %510 = vperm.xlu1 %1067, %v452_v10  }
  0x4d   :  { %1072 = vset.pattern.permute.xlu0 %v1142_v43 }
  0x4e   :  { %515 = vperm.xlu1 %1067, %v1338_v17  }
  0x52   :  { %1068 = vset.pattern.permute.xlu1 %v1142_v43 }
  0x53   :  { %780 = vperm.xlu1 %1068, %v450_v4  }
  0x57   :  { %784 = vperm.xlu1 %1068, %v451_v13  }
  0x5b   :  { %1069 = vset.pattern.permute.xlu1 %v1141_v24 }
  0xc6   :  { %v1008_v20 = vpop.f32.mrf.mxu0 }
  0xc7   :  { %v348_v22 = vmul.f32 0.2, %v1008_v20 }
  0xc8   :  { %v219_v21 = vpop.f32.mrf.mxu0 }
  0xc9   :  { %v346_v26 = vmul.f32 0.2, %v219_v21  ;;  %v380_v29 = vmax.f32 %v1008_v20, %v348_v22 }
  0xca   :  { %v1009_v23 = vpop.f32.mrf.mxu0 }
  0xcb   :  { %v349_v27 = vmul.f32 0.2, %v1009_v23  ;;  %v378_v34 = vmax.f32 %v219_v21, %v346_v26 }
  0xcc   :  { %v222_v28 = vpop.f32.mrf.mxu0 }
  0xcd   :  { %v381_v30 = vmax.f32 %v1009_v23, %v349_v27  ;;  %v347_v31 = vmul.f32 0.2, %v222_v28 }
  0xce   :  { %v1012_v32 = vpop.f32.mrf.mxu0 }
  0xcf   :  { %v1251_v35 = vpack.c.bf16 %v381_v30, %v380_v29  ;;  %v379_v36 = vmax.f32 %v222_v28, %v347_v31  ;;  %v352_v39 = vmul.f32 0.2, %v1012_v32 }
  0xd0   :  { %v235_v37 = vpop.f32.mrf.mxu0 }
  0xd1   :  { %v1253_v38 = vpack.c.bf16 %v379_v36, %v378_v34  ;;  %v350_v41 = vmul.f32 0.2, %v235_v37  ;;  %v384_v46 = vmax.f32 %v1012_v32, %v352_v39  ;;  %v456_v32 = vld [vmem:[%s1496_s3 + $0x70] sm:$0xff] }
  0xd2   :  { %v1013_v40 = vpop.f32.mrf.mxu0  ;;  %804 = vperm.xlu0 %1072, %v456_v32  }
  0xd3   :  { %v353_v42 = vmul.f32 0.2, %v1013_v40  ;;  %v382_v50 = vmax.f32 %v235_v37, %v350_v41 }
  0xd4   :  { %v238_v45 = vpop.f32.mrf.mxu0 }
  0xd5   :  { %v385_v47 = vmax.f32 %v1013_v40, %v353_v42  ;;  %v351_v48 = vmul.f32 0.2, %v238_v45 }
  0xd6   :  { %v1259_v49 = vpop.f32.mrf.mxu0 }
  0xd7   :  { %v1261_v51 = vpack.c.bf16 %v385_v47, %v384_v46  ;;  %v383_v52 = vmax.f32 %v238_v45, %v351_v48  ;;  %v356_v56 = vmul.f32 0.2, %v1259_v49 }
  0xd8   :  { %v1263_v53 = vpop.f32.mrf.mxu0 }
  0xd9   :  { %v1269_v55 = vpack.c.bf16 %v383_v52, %v382_v50 }
  0xda   :  { %v1274_v57 = vpop.f32.mrf.mxu0 }
  0xdb   :  { %v357_v46 = vmul.f32 0.2, %v1274_v57 }
  0xdc   :  { %v1279_v59 = vpop.f32.mrf.mxu0 }
  0xdd   :  { %v355_v1 = vmul.f32 0.2, %v1279_v59 }
  0xde   :  { %v1282_v60 = vpop.f32.mrf.mxu0 }
  0xdf   :  { %v360_v25 = vmul.f32 0.2, %v1282_v60 }
  0xe0   :  { %v1284_v61 = vpop.f32.mrf.mxu0 }
  0xe1   :  { %v392_v39 = vmax.f32 %v1282_v60, %v360_v25  ;;  %v358_v40 = vmul.f32 0.2, %v1284_v61  ;;  %v1370_v60 = vld [vmem:[%s1496_s3 + $0x68] sm:$0xff] }
  0xe2   :  { %v1289_v63 = vpop.f32.mrf.mxu0  ;;  %525 = vperm.xlu1 %1069, %v1370_v60  }
  0xe3   :  { %v361_v21 = vmul.f32 0.2, %v1289_v63  ;;  %v390_v58 = vmax.f32 %v1284_v61, %v358_v40  ;;  %v1143_v61 = vmov 2   ;;  %v1114_v40 = vld [vmem:[%s1495_s2 + $0x70] ss:$8 sps:$4 sm:$0xff]  }
  0xe4   :  { %v1291_v0 = vpop.f32.mrf.mxu0  ;;  %1074 = vset.pattern.permute.xlu0 %v1143_v61 }
  0xe5   :  { %v393_v29 = vmax.f32 %v1289_v63, %v361_v21  ;;  %v359_v30 = vmul.f32 0.2, %v1291_v0 }
  0xe6   :  { %v1296_v2 = vpop.f32.mrf.mxu0  ;;  %530 = vperm.xlu1 %1069, %v456_v32   ;;  %v1105_v32 = vld [vmem:[%s1495_s2 + $0x40] ss:$8 sps:$4 sm:$0xff]  }
  0xe7   :  { %v433_v47 = vpack.c.bf16 %v393_v29, %v392_v39  ;;  %v391_v48 = vmax.f32 %v1291_v0, %v359_v30  ;;  %v389_v0 = vmax.f32 %v1274_v57, %v357_v46  ;;  %v1112_v39 = vld [vmem:[%s1495_s2 + $0x74] ss:$8 sps:$4 sm:$0xff]  }
  0xe8   :  { %v1300_v3 = vpop.f32.mrf.mxu0 }
  0xe9   :  { %v432_v4 = vpack.c.bf16 %v391_v48, %v390_v58 }
  0xea   :  { %v1305_v5 = vpop.f32.mrf.mxu0  ;;  %1071 = vset.pattern.permute.xlu1 %v1142_v43 }
  0xeb   :  { %792 = vperm.xlu1 %1071, %v1338_v17  }
  0xec   :  { %v1307_v6 = vpop.f32.mrf.mxu0 }
  0xed   :  { %v363_v30 = vmul.f32 0.2, %v1307_v6 }
  0xee   :  { %v1309_v7 = vpop.f32.mrf.mxu0 }
  0xef   :  { %v368_v57 = vmul.f32 0.2, %v1309_v7  ;;  %796 = vperm.xlu1 %1071, %v1333_v15   ;;  %v395_v17 = vmax.f32 %v1307_v6, %v363_v30  ;;  %v1099_v6 = vld [vmem:[%s1495_s2 + $0x20] ss:$8 sps:$4 sm:$0xff]   ;;  %v1102_v15 = vld [vmem:[%s1495_s2 + $0x30] ss:$8 sps:$4 sm:$0xff]  }
  0xf0   :  { %v1312_v8 = vpop.f32.mrf.mxu0 }
  0xf2   :  { %v1314_v9 = vpop.f32.mrf.mxu0 }
  0xf3   :  { %v369_v10 = vmul.f32 0.2, %v1314_v9  ;;  %800 = vperm.xlu1 %1071, %v1370_v60  }
  0xf4   :  { %v1319_v11 = vpop.f32.mrf.mxu0 }
  0xf6   :  { %v1321_v12 = vpop.f32.mrf.mxu0 }
  0xf7   :  { %v372_v41 = vmul.f32 0.2, %v1321_v12  ;;  %808 = vperm.xlu1 %1071, %v1347_v19   ;;  %v1103_v19 = vld [vmem:[%s1495_s2 + $0x44] ss:$8 sps:$4 sm:$0xff]  }
  0xf8   :  { %v1327_v14 = vpop.f32.mrf.mxu0 }
  0xf9   :  { %v404_v62 = vmax.f32 %v1321_v12, %v372_v41  ;;  %v370_v63 = vmul.f32 0.2, %v1327_v14  ;;  %v388_v12 = vmax.f32 %v1259_v49, %v356_v56  ;;  %v471_v41 = vpop.permute.xlu1 %470 }
  0xfa   :  { %v1033_v16 = vpop.f32.mrf.mxu0 }
  0xfb   :  { %v373_v33 = vmul.f32 0.2, %v1033_v16  ;;  %v402_v24 = vmax.f32 %v1327_v14, %v370_v63  ;;  %v431_v21 = vpack.c.bf16 %v389_v0, %v388_v12  ;;  %1073 = vset.pattern.permute.xlu1 %v1143_v61 }
  0xfc   :  { %v1340_v18 = vpop.f32.mrf.mxu0 }
  0xfd   :  { %v405_v50 = vmax.f32 %v1033_v16, %v373_v33  ;;  %v371_v52 = vmul.f32 0.2, %v1340_v18  ;;  %v1106_v33 = vld [vmem:[%s1495_s2 + $0x54] ss:$8 sps:$4 sm:$0xff]  }
  0xfe   :  { %v1036_v20 = vpop.f32.mrf.mxu0 }
  0xff   :  { %v376_v23 = vmul.f32 0.2, %v1036_v20  ;;  %v439_v13 = vpack.c.bf16 %v405_v50, %v404_v62  ;;  %v403_v16 = vmax.f32 %v1340_v18, %v371_v52  ;;  %v367_v18 = vmul.f32 0.2, %v1319_v11  ;;  %v461_v50 = vpop.permute.xlu0 %460 }
 0x100   :  { %v331_v22 = vpop.f32.mrf.mxu0 }
 0x101   :  { %v374_v27 = vmul.f32 0.2, %v331_v22  ;;  %v408_v34 = vmax.f32 %v1036_v20, %v376_v23  ;;  %v354_v20 = vmul.f32 0.2, %v1263_v53  ;;  %v401_v23 = vmax.f32 %v1314_v9, %v369_v10 }
 0x102   :  { %v1037_v26 = vpop.f32.mrf.mxu0  ;;  %v438_v25 = vpack.c.bf16 %v403_v16, %v402_v24  ;;  %v399_v9 = vmax.f32 %v1319_v11, %v367_v18  ;;  %v362_v11 = vmul.f32 0.2, %v1300_v3 }
 0x103   :  { %v377_v28 = vmul.f32 0.2, %v1037_v26  ;;  %v406_v42 = vmax.f32 %v331_v22, %v374_v27  ;;  %v387_v22 = vmax.f32 %v1279_v59, %v355_v1  ;;  %v386_v49 = vmax.f32 %v1263_v53, %v354_v20 }
 0x104   :  { %v334_v31 = vpop.f32.mrf.mxu0  ;;  %v366_v27 = vmul.f32 0.2, %v1312_v8  ;;  %v364_v53 = vmul.f32 0.2, %v1296_v2 }
 0x105   :  { %v409_v36 = vmax.f32 %v1037_v26, %v377_v28  ;;  %v375_v37 = vmul.f32 0.2, %v334_v31  ;;  %v400_v26 = vmax.f32 %v1309_v7, %v368_v57  ;;  %v430_v14 = vpack.c.bf16 %v387_v22, %v386_v49 }
 0x106   :  { %v365_v28 = vmul.f32 0.2, %v1305_v5  ;;  %v398_v29 = vmax.f32 %v1312_v8, %v366_v27  ;;  %v396_v43 = vmax.f32 %v1296_v2, %v364_v53  ;;  %v1091_v2 = vld [vmem:[%s1495_s2] ss:$8 sps:$4 sm:$0xff]  }
 0x107   :  { %v441_v44 = vpack.c.bf16 %v409_v36, %v408_v34  ;;  %v407_v45 = vmax.f32 %v334_v31, %v375_v37  ;;  %v437_v59 = vpack.c.bf16 %v401_v23, %v400_v26  ;;  %v1108_v34 = vld [vmem:[%s1495_s2 + $0x50] ss:$8 sps:$4 sm:$0xff]   ;;  %v1109_v36 = vld [vmem:[%s1495_s2 + $0x64] ss:$8 sps:$4 sm:$0xff]   ;;  %v1111_v37 = vld [vmem:[%s1495_s2 + $0x60] ss:$8 sps:$4 sm:$0xff]  }
 0x108   :  { %v397_v7 = vmax.f32 %v1305_v5, %v365_v28  ;;  %v436_v31 = vpack.c.bf16 %v399_v9, %v398_v29  ;;  %v394_v5 = vmax.f32 %v1300_v3, %v362_v11  ;;  %v848_v3 = vld [vmem:[%s1496_s3] sm:$0x1] }
 0x109   :  { %v440_v54 = vpack.c.bf16 %v407_v45, %v406_v42  ;;  %940 = vmatprep.subr.bf16.mxu0 %v441_v44  ;;  %1038 = vmatprep.subr.bf16.mxu1 %v441_v44  ;;  %v476_v42 = vpop.permute.xlu1 %475 }
 0x10a   :  { %941 = vmatpush3.bf16.msra.mxu0 %v433_v47  ;;  %1046 = vmatpush3.bf16.msra.mxu1 %v433_v47  ;;  %v435_v8 = vpack.c.bf16 %v397_v7, %v396_v43 }
 0x10b   :  { %942 = vmatprep.subr.bf16.mxu0 %v440_v54  ;;  %1039 = vmatprep.subr.bf16.mxu1 %v440_v54  ;;  %v466_v54 = vpop.permute.xlu0 %465 }
 0x10c   :  { %851 = vperm.xlu1 %1073, %v848_v3  }
 0x10d   :  { %v749_v44 = vpop.permute.xlu1 %748 }
 0x10e   :  { %943 = vmatpush3.bf16.msra.mxu0 %v432_v4  ;;  %1047 = vmatpush3.bf16.msra.mxu1 %v432_v4 }
 0x10f   :  { %944 = vmatprep.subr.bf16.mxu0 %v439_v13  ;;  %1040 = vmatprep.subr.bf16.mxu1 %v439_v13  ;;  %v481_v58 = vpop.permute.xlu0 %480 }
 0x111   :  { %v486_v45 = vpop.permute.xlu1 %485 }
 0x112   :  { %945 = vmatpush3.bf16.msra.mxu0 %v431_v21  ;;  %1048 = vmatpush3.bf16.msra.mxu1 %v431_v21 }
 0x113   :  { %946 = vmatprep.subr.bf16.mxu0 %v438_v25  ;;  %1041 = vmatprep.subr.bf16.mxu1 %v438_v25  ;;  %v491_v4 = vpop.permute.xlu0 %490 }
 0x115   :  { %v757_v46 = vpop.permute.xlu1 %756 }
 0x116   :  { %947 = vmatpush3.bf16.msra.mxu0 %v430_v14  ;;  %1049 = vmatpush3.bf16.msra.mxu1 %v430_v14 }
 0x117   :  { %948 = vmatprep.subr.bf16.mxu0 %v437_v59  ;;  %1042 = vmatprep.subr.bf16.mxu1 %v437_v59  ;;  %v753_v22 = vpop.permute.xlu0 %752 }
 0x119   :  { %v1460_v47 = vpop.permute.xlu1 %760 }
 0x11a   :  { %949 = vmatpush3.bf16.msra.mxu0 %v1261_v51  ;;  %1050 = vmatpush3.bf16.msra.mxu1 %v1261_v51  ;;  %v434_v51 = vpack.c.bf16 %v395_v17, %v394_v5 }
 0x11b   :  { %950 = vmatprep.subr.bf16.mxu0 %v436_v31  ;;  %1043 = vmatprep.subr.bf16.mxu1 %v436_v31  ;;  %v765_v59 = vpop.permute.xlu0 %764 }
 0x11d   :  { %v1462_v48 = vpop.permute.xlu1 %495 }
 0x11e   :  { %951 = vmatpush3.bf16.msra.mxu0 %v1269_v55  ;;  %1051 = vmatpush3.bf16.msra.mxu1 %v1269_v55  ;;  %v1094_v55 = vld [vmem:[%s1495_s2 + $0x10] ss:$8 sps:$4 sm:$0xff]  }
 0x11f   :  { %952 = vmatprep.subr.bf16.mxu0 %v435_v8  ;;  %1044 = vmatprep.subr.bf16.mxu1 %v435_v8 }
 0x121   :  { %v1464_v52 = vpop.permute.xlu1 %500 }
 0x122   :  { %953 = vmatpush3.bf16.msra.mxu0 %v1251_v35  ;;  %1052 = vmatpush3.bf16.msra.mxu1 %v1251_v35  ;;  %v1097_v35 = vld [vmem:[%s1495_s2 + $0x24] ss:$8 sps:$4 sm:$0xff]  }
 0x123   :  { %954 = vmatprep.subr.bf16.mxu0 %v434_v51  ;;  %1045 = vmatprep.subr.bf16.mxu1 %v434_v51 }
 0x125   :  { %v1466_v56 = vpop.permute.xlu1 %768 }
 0x126   :  { %955 = vmatpush3.bf16.msra.mxu0 %v1253_v38  ;;  %1053 = vmatpush3.bf16.msra.mxu1 %v1253_v38  ;;  %v1100_v38 = vld [vmem:[%s1495_s2 + $0x34] ss:$8 sps:$4 sm:$0xff]   ;;  %s1144_s2 = smov [#allocation2]  }
 0x127   :  { %s867_s29 = sshll.u32 %s1144_s2, 4  ;;  %s868_s29 = int_to_ptr.vmem [resolvable:$true] %s867_s29 }
 0x128   :  { %s1119_s30 = scalar_lea.vmem %s868_s29, 16  ;;  %s1123_s5 = scalar_lea.vmem %s868_s29, 32 }
 0x129   :  { %651 = vmatmul.mubr.bf16.vlgmr.msra.gmra.mxu0 %v1091_v2  ;;  %659 = vmatmul.mubr.bf16.vlgmr.msra.gmra.mxu1 %v1094_v55  ;;  %v1468_v63 = vpop.permute.xlu1 %772  ;;  %v777_v2 = vpop.permute.xlu0 %776  ;;  %p1120_p0 = scmp.ne.s32.totalorder %s868_s29, %s1119_s30  ;;  %p1124_p1 = scmp.lt.s32.totalorder %s868_s29, %s868_s29 }
 0x12a   :  { %666 = vmatprep.mubr.bf16.mxu1 %v1097_v35  ;;  %p1125_p2 = scmp.lt.s32.totalorder %s1123_s5, %s1119_s30 }
 0x12c   :  { %p1126_p3 = por %p1125_p2, %p1124_p1 }
 0x12d   :  { %v1470_v57 = vpop.permute.xlu1 %510 }
 0x12e   :  { %p1127_p4 = pnand %p1126_p3, %p1120_p0 }
 0x131   :  { %667 = vmatmul.mubr.bf16.gmra.mxu1 %v1099_v6  ;;  %v1472_v27 = vpop.permute.xlu1 %515 }
 0x132   :  { %674 = vmatprep.mubr.bf16.mxu1 %v1100_v38 }
 0x135   :  { %v1474_v43 = vpop.permute.xlu1 %780 }
 0x139   :  { %675 = vmatmul.mubr.bf16.gmra.mxu1 %v1102_v15 }
 0x13a   :  { %682 = vmatprep.mubr.bf16.mxu1 %v1103_v19 }
 0x141   :  { %683 = vmatmul.mubr.bf16.gmra.mxu1 %v1105_v32 }
 0x142   :  { %690 = vmatprep.mubr.bf16.mxu1 %v1106_v33 }
 0x149   :  { %691 = vmatmul.mubr.bf16.gmra.mxu1 %v1108_v34  ;;  %v1476_v34 = vpop.permute.xlu1 %784 }
 0x14a   :  { %698 = vmatprep.mubr.bf16.mxu1 %v1109_v36 }
 0x151   :  { %699 = vmatmul.mubr.bf16.gmra.mxu1 %v1111_v37 }
 0x152   :  { %706 = vmatprep.mubr.bf16.mxu1 %v1112_v39 }
 0x159   :  { %707 = vmatmul.mubr.bf16.gmra.mxu1 %v1114_v40  ;;  %v1478_v40 = vpop.permute.xlu0 %788 }
 0x1e9   :  { %v956_v60 = vpop.f32.mrf.mxu0  ;;  %v962_v62 = vpop.f32.mrf.mxu1 }
 0x1eb   :  { %v957_v0 = vpop.f32.mrf.mxu0  ;;  %v963_v1 = vpop.f32.mrf.mxu1 }
 0x1ec   :  { %v958_v24 = vadd.f32 %v957_v0, %v956_v60  ;;  %v964_v25 = vadd.f32 %v963_v1, %v962_v62 }
 0x1ed   :  { %v959_v61 = vpop.f32.mrf.mxu0  ;;  %v965_v10 = vpop.f32.mrf.mxu1 }
 0x1ee   :  { %v653_v49 = vadd.f32 %v958_v24, %v461_v50  ;;  %v661_v9 = vadd.f32 %v964_v25, %v471_v41  ;;  %v506_v24 = vpop.permute.xlu0 %505 }
 0x1ef   :  { %v960_v13 = vpop.f32.mrf.mxu0  ;;  %v966_v16 = vpop.f32.mrf.mxu1 }
 0x1f0   :  { %v961_v12 = vadd.f32 %v960_v13, %v959_v61  ;;  %v715_v53 = vmul.f32 0.2, %v653_v49  ;;  %v967_v29 = vadd.f32 %v966_v16, %v965_v10  ;;  %v717_v11 = vmul.f32 0.2, %v661_v9  ;;  %v526_v10 = vpop.permute.xlu1 %525 }
 0x1f1   :  { %v968_v20 = vpop.f32.mrf.mxu1 }
 0x1f2   :  { %v656_v23 = vadd.f32 %v961_v12, %v466_v54  ;;  %v731_v8 = vmax.f32 %v653_v49, %v715_v53  ;;  %v664_v17 = vadd.f32 %v967_v29, %v476_v42  ;;  %v733_v6 = vmax.f32 %v661_v9, %v717_v11 }
 0x1f3   :  { %v969_v21 = vpop.f32.mrf.mxu1 }
 0x1f4   :  { %v716_v14 = vmul.f32 0.2, %v656_v23  ;;  %v970_v5 = vadd.f32 %v969_v21, %v968_v20  ;;  %v718_v38 = vmul.f32 0.2, %v664_v17  ;;  %v811_v19 = vmul.f32 %v749_v44, %v731_v8 }
 0x1f5   :  { %v971_v18 = vpop.f32.mrf.mxu1  ;;  %v813_v42 = vmul.f32 %v757_v46, %v733_v6 }
 0x1f6   :  { %v732_v30 = vmax.f32 %v656_v23, %v716_v14  ;;  %v669_v15 = vadd.f32 %v970_v5, %v481_v58  ;;  %v734_v50 = vmax.f32 %v664_v17, %v718_v38 }
 0x1f7   :  { %v972_v26 = vpop.f32.mrf.mxu1 }
 0x1f8   :  { %v812_v55 = vmul.f32 %v753_v22, %v732_v30  ;;  %v973_v35 = vadd.f32 %v972_v26, %v971_v18  ;;  %v719_v60 = vmul.f32 0.2, %v669_v15 }
 0x1f9   :  { %v974_v28 = vpop.f32.mrf.mxu1 }
 0x1fa   :  { %v827_v36 = vadd.f32 %v812_v55, %v811_v19  ;;  %v672_v37 = vadd.f32 %v973_v35, %v486_v45  ;;  %v735_v12 = vmax.f32 %v669_v15, %v719_v60  ;;  %v814_v45 = vmul.f32 %v1460_v47, %v734_v50 }
 0x1fb   :  { %v975_v7 = vpop.f32.mrf.mxu1 }
 0x1fc   :  { %v976_v32 = vadd.f32 %v975_v7, %v974_v28  ;;  %v828_v1 = vadd.f32 %v827_v36, %v813_v42  ;;  %v720_v61 = vmul.f32 0.2, %v672_v37  ;;  %v815_v26 = vmul.f32 %v765_v59, %v735_v12  ;;  %v531_v28 = vpop.permute.xlu1 %530 }
 0x1fd   :  { %v977_v31 = vpop.f32.mrf.mxu1 }
 0x1fe   :  { %v677_v54 = vadd.f32 %v976_v32, %v491_v4  ;;  %v736_v4 = vmax.f32 %v672_v37, %v720_v61  ;;  %v829_v22 = vadd.f32 %v828_v1, %v814_v45 }
 0x1ff   :  { %v978_v51 = vpop.f32.mrf.mxu1 }
 0x200   :  { %v979_v39 = vadd.f32 %v978_v51, %v977_v31  ;;  %v721_v16 = vmul.f32 0.2, %v677_v54  ;;  %v816_v47 = vmul.f32 %v1466_v56, %v736_v4  ;;  %v830_v29 = vadd.f32 %v829_v22, %v815_v26  ;;  %v521_v51 = vpop.permute.xlu0 %520 }
 0x201   :  { %v980_v3 = vpop.f32.mrf.mxu1 }
 0x202   :  { %v680_v44 = vadd.f32 %v979_v39, %v1462_v48  ;;  %v737_v49 = vmax.f32 %v677_v54, %v721_v16  ;;  %v831_v55 = vadd.f32 %v830_v29, %v816_v47 }
 0x203   :  { %v981_v33 = vpop.f32.mrf.mxu1 }
 0x204   :  { %v982_v62 = vadd.f32 %v981_v33, %v980_v3  ;;  %v722_v23 = vmul.f32 0.2, %v680_v44  ;;  %v817_v11 = vmul.f32 %v1468_v63, %v737_v49 }
 0x205   :  { %v983_v41 = vpop.f32.mrf.mxu1 }
 0x206   :  { %v685_v20 = vadd.f32 %v982_v62, %v1464_v52  ;;  %v738_v52 = vmax.f32 %v680_v44, %v722_v23  ;;  %v832_v15 = vadd.f32 %v831_v55, %v817_v11 }
 0x207   :  { %v984_v0 = vpop.f32.mrf.mxu1 }
 0x208   :  { %v985_v13 = vadd.f32 %v984_v0, %v983_v41  ;;  %v723_v48 = vmul.f32 0.2, %v685_v20  ;;  %v818_v35 = vmul.f32 %v777_v2, %v738_v52 }
 0x209   :  { %v986_v58 = vpop.f32.mrf.mxu1 }
 0x20a   :  { %v688_v25 = vadd.f32 %v985_v13, %v506_v24  ;;  %v739_v8 = vmax.f32 %v685_v20, %v723_v48  ;;  %v833_v63 = vadd.f32 %v832_v15, %v818_v35 }
 0x20b   :  { %v987_v46 = vpop.f32.mrf.mxu1 }
 0x20c   :  { %v988_v21 = vadd.f32 %v987_v46, %v986_v58  ;;  %v724_v30 = vmul.f32 0.2, %v688_v25  ;;  %v819_v19 = vmul.f32 %v1474_v43, %v739_v8  ;;  %v536_v43 = vpop.permute.xlu0 %535 }
 0x20d   :  { %v989_v18 = vpop.f32.mrf.mxu1 }
 0x20e   :  { %v693_v9 = vadd.f32 %v988_v21, %v1470_v57  ;;  %v793_v57 = vpop.permute.xlu1 %792  ;;  %v740_v6 = vmax.f32 %v688_v25, %v724_v30  ;;  %v834_v50 = vadd.f32 %v833_v63, %v819_v19 }
 0x20f   :  { %v990_v14 = vpop.f32.mrf.mxu1 }
 0x210   :  { %v991_v53 = vadd.f32 %v990_v14, %v989_v18  ;;  %v725_v5 = vmul.f32 0.2, %v693_v9  ;;  %v820_v39 = vmul.f32 %v1476_v34, %v740_v6  ;;  %v805_v46 = vpop.permute.xlu0 %804 }
 0x211   :  { %v992_v7 = vpop.f32.mrf.mxu1 }
 0x212   :  { %v696_v31 = vadd.f32 %v991_v53, %v1472_v27  ;;  %v741_v33 = vmax.f32 %v693_v9, %v725_v5  ;;  %v797_v2 = vpop.permute.xlu1 %796  ;;  %v835_v44 = vadd.f32 %v834_v50, %v820_v39 }
 0x213   :  { %v993_v17 = vpop.f32.mrf.mxu1 }
 0x214   :  { %v994_v59 = vadd.f32 %v993_v17, %v992_v7  ;;  %v726_v56 = vmul.f32 0.2, %v696_v31  ;;  %v821_v60 = vmul.f32 %v1478_v40, %v741_v33 }
 0x215   :  { %v995_v3 = vpop.f32.mrf.mxu1 }
 0x216   :  { %v701_v38 = vadd.f32 %v994_v59, %v521_v51  ;;  %v742_v41 = vmax.f32 %v696_v31, %v726_v56  ;;  %v836_v45 = vadd.f32 %v835_v44, %v821_v60 }
 0x217   :  { %v996_v32 = vpop.f32.mrf.mxu1 }
 0x218   :  { %v727_v27 = vmul.f32 0.2, %v701_v38  ;;  %v997_v36 = vadd.f32 %v996_v32, %v995_v3  ;;  %v822_v58 = vmul.f32 %v793_v57, %v742_v41 }
 0x219   :  { %v998_v37 = vpop.f32.mrf.mxu1 }
 0x21a   :  { %v704_v42 = vadd.f32 %v997_v36, %v526_v10  ;;  %v743_v62 = vmax.f32 %v701_v38, %v727_v27  ;;  %v801_v10 = vpop.permute.xlu1 %800  ;;  %v837_v21 = vadd.f32 %v836_v45, %v822_v58 }
 0x21b   :  { %v999_v54 = vpop.f32.mrf.mxu1 }
 0x21c   :  { %v1000_v0 = vadd.f32 %v999_v54, %v998_v37  ;;  %v728_v1 = vmul.f32 0.2, %v704_v42  ;;  %v823_v20 = vmul.f32 %v797_v2, %v743_v62 }
 0x21d   :  { %v1001_v61 = vpop.f32.mrf.mxu1 }
 0x21e   :  { %v709_v13 = vadd.f32 %v1000_v0, %v531_v28  ;;  %v744_v16 = vmax.f32 %v704_v42, %v728_v1  ;;  %v838_v23 = vadd.f32 %v837_v21, %v823_v20  ;;  %v809_v48 = vpop.permute.xlu1 %808 }
 0x21f   :  { %v1002_v12 = vpop.f32.mrf.mxu1 }
 0x220   :  { %v1003_v34 = vadd.f32 %v1002_v12, %v1001_v61  ;;  %v729_v24 = vmul.f32 0.2, %v709_v13  ;;  %v824_v4 = vmul.f32 %v801_v10, %v744_v16 }
 0x222   :  { %v712_v22 = vadd.f32 %v1003_v34, %v536_v43  ;;  %v745_v40 = vmax.f32 %v709_v13, %v729_v24  ;;  %v839_v49 = vadd.f32 %v838_v23, %v824_v4  ;;  %v852_v30 = vpop.permute.xlu1 %851 }
 0x224   :  { %v825_v18 = vmul.f32 %v805_v46, %v745_v40  ;;  %v730_v25 = vmul.f32 0.2, %v712_v22 }
 0x226   :  { %v746_v26 = vmax.f32 %v712_v22, %v730_v25  ;;  %v840_v14 = vadd.f32 %v839_v49, %v825_v18 }
 0x228   :  { %v826_v28 = vmul.f32 %v809_v48, %v746_v26 }
 0x22a   :  { %v841_v9 = vadd.f32 %v840_v14, %v826_v28 }
 0x22c   :  { %v842_v53 = vrot.slane %v841_v9, 4 }
 0x22e   :  { %v843_v47 = vadd.f32 %v842_v53, %v841_v9 }
 0x230   :  { %v844_v29 = vrot.slane %v843_v47, 2 }
 0x232   :  { %v845_v52 = vadd.f32 %v844_v29, %v843_v47 }
 0x234   :  { %v846_v7 = vrot.slane %v845_v52, 1 }
 0x236   :  { %v847_v31 = vadd.f32 %v846_v7, %v845_v52 }
 0x238   :  { %v854_v11 = vadd.f32 %v852_v30, %v847_v31 }
 0x23a   :  { %v855_v8 = vsub.f32 0.0, %v854_v11 }
 0x23c   :  { %v856_v17 = vmul.f32 1.442695, %v855_v8 }
 0x23e   :  { %1115 = vpow2.f32 %v856_v17 }
 0x24b   :  { %v1116_v5 = vpop.eup %1115 }
 0x24c   :  { %v858_v59 = vadd.f32 1.0, %v1116_v5 }
 0x24e   :  { %1117 = vrcp.f32 %v858_v59 }
 0x25b   :  { %v1118_v51 = vpop.eup %1117 }
 0x25c   :  { %860 = vst [vmem:[#allocation2] sm:$0x1] %v1118_v51 }
 0x25d   :  { %1130 = shalt.err (!%p1127_p4)
}
 0x25e   :  { %870 = dma.vmem_to_hbm [thread:$0]  %s868_s29, 16, %s1497_s4, [#allocation3]  }
 0x25f   :  { %1139 = dma.done.wait [#allocation3], 16  }
 0x260   :  { %1140 = vsyncadd [#allocation3], 4294967280 }
 0x261   :  { %874 = vsyncpa [#allocation3], 1 }

</bundles_post_ra>
